<compile_context>
chip_gen: v6e
topology: v6e:2x2x1
jax: 0.10.0
libtpu: 0.0.40
codegen_flags: <defaults>
</compile_context>

<pallas_src>
import jax
import jax.numpy as jnp
from jax.experimental import pallas as pl
from jax.experimental.pallas import tpu as pltpu


def _round_up(x, m):
    return (x + m - 1) // m * m


def combined_model_kernel(
    x_ref,               # (Bt, Din)  f32 flattened NCHW image tile
    wb_ref, bb_ref,      # backbone linear:        (Din, F) bf16, (1, F)  f32
    w1_ref, b1_ref,      # fc1 with bn1 folded in: (F, H1)  bf16, (1, H1) f32
    w2_ref, b2_ref,      # fc2 with bn2 folded in: (H1, H2) bf16, (1, H2) f32
    w3_ref, b3_ref,      # fc3 (classes padded):   (H2, Cp) bf16, (1, Cp) f32
    o_ref,               # (Bt, Cp) bf16 logits (padded, sliced/upcast outside)
):
    # Backbone: Flatten (done in wrapper) -> Linear -> ReLU.
    # Cast x f32 -> bf16 here (VPU, hidden under the DMA/MXU) instead of in a
    # wrapper pre-pass -> halves the x HBM traffic.
    x = x_ref[...].astype(jnp.bfloat16)
    f = jnp.dot(x, wb_ref[...], preferred_element_type=jnp.float32)
    f = jnp.maximum(f + bb_ref[...], 0.0)

    # fc1 -> bn1 (folded into w1/b1) -> relu1 -> dropout1 (identity, eval)
    h1 = jnp.dot(f.astype(jnp.bfloat16), w1_ref[...],
                 preferred_element_type=jnp.float32) + b1_ref[...]
    h1 = jnp.maximum(h1, 0.0)

    # fc2 -> bn2 (folded into w2/b2) -> relu2 -> dropout2 (identity, eval)
    h2 = jnp.dot(h1.astype(jnp.bfloat16), w2_ref[...],
                 preferred_element_type=jnp.float32) + b2_ref[...]
    h2 = jnp.maximum(h2, 0.0)

    # fc3 -- output padded to a full 128-lane width => unmasked stores.
    # f32 accumulation, bf16 store (writeback traffic halved).
    logits = jnp.dot(h2.astype(jnp.bfloat16), w3_ref[...],
                     preferred_element_type=jnp.float32) + b3_ref[...]
    o_ref[...] = logits.astype(o_ref.dtype)


@jax.jit
def combined_model_forward(x_nchw, params):
    """x_nchw: (B, C, H, W) float32.  Returns (B, num_classes) float32 logits."""
    B = x_nchw.shape[0]
    x_flat = x_nchw.reshape(B, -1).astype(jnp.float32)  # torch.flatten(x, 1)
    Din = x_flat.shape[1]

    (wb, bb, w1, b1, g1, be1, m1, v1,
     w2, b2, g2, be2, m2, v2, w3, b3) = params
    eps = 1e-5

    # ---- parameter prep (glue, folded by XLA / amortized per call) ----------
    # Fold BatchNorm1d (eval mode) into the preceding Linear.  Since the BN
    # affine sits between the matmul and the ReLU this is algebraically exact:
    #   relu(s * (x@w + b) + t) == relu(x @ (w*s) + (b*s + t))
    s1 = g1 / jnp.sqrt(v1 + eps)
    t1 = be1 - m1 * s1
    s2 = g2 / jnp.sqrt(v2 + eps)
    t2 = be2 - m2 * s2
    w1f = w1 * s1[None, :]
    b1f = b1 * s1 + t1
    w2f = w2 * s2[None, :]
    b2f = b2 * s2 + t2

    # Pad classifier columns to a full 128-lane output (sliced back afterwards).
    C = w3.shape[1]
    Cp = _round_up(C, 128)
    w3p = jnp.zeros((w3.shape[0], Cp), w3.dtype).at[:, :C].set(w3)
    b3p = jnp.zeros((Cp,), b3.dtype).at[:C].set(b3)

    def bf16(w):   # bf16 matmul operands
        return w.astype(jnp.bfloat16)

    def row(v):    # f32 biases, kept 2-D for TPU layout
        return v.reshape(1, -1).astype(jnp.float32)

    # ---- batch tiling --------------------------------------------------------
    # Largest tile (cap 1024) that still yields >= 2 grid steps when the batch
    # allows it, so both v7x TensorCores get work via dimension_semantics.
    half = max(16, _round_up(-(-B // 2), 16))      # ceil(B/2) rounded up to 16
    block_b = min(1024, half)
    # VMEM guard: keep the double-buffered f32 x tile within ~24 MiB.
    while block_b > 16 and block_b * Din * 4 * 2 > 24 * 1024 * 1024:
        block_b //= 2
    block_b = max(16, _round_up(block_b, 16))

    Bp = _round_up(B, block_b)
    # Only the ragged last tile gets padded (no wrapper-side dtype-cast pass).
    x_in = x_flat if Bp == B else jnp.pad(x_flat, ((0, Bp - B), (0, 0)))

    F = wb.shape[1]
    H1 = w1.shape[1]
    H2 = w2.shape[1]

    def const_spec(shape):  # weights/biases stay resident across grid steps
        return pl.BlockSpec(shape, lambda i: (0, 0))

    out = pl.pallas_call(
        combined_model_kernel,
        out_shape=jax.ShapeDtypeStruct((Bp, Cp), jnp.bfloat16),
        grid_spec=pltpu.PrefetchScalarGridSpec(
            num_scalar_prefetch=0,
            grid=(Bp // block_b,),
            in_specs=[
                pl.BlockSpec((block_b, Din), lambda i: (i, 0)),   # x tile (f32)
                const_spec((Din, F)), const_spec((1, F)),          # backbone
                const_spec((F, H1)), const_spec((1, H1)),          # fc1+bn1
                const_spec((H1, H2)), const_spec((1, H2)),         # fc2+bn2
                const_spec((H2, Cp)), const_spec((1, Cp)),         # fc3 (padded)
            ],
            out_specs=pl.BlockSpec((block_b, Cp), lambda i: (i, 0)),
        ),
        compiler_params=pltpu.CompilerParams(
            dimension_semantics=("parallel",)),   # shards batch across v7x TCs
    )(
        x_in,
        bf16(wb), row(bb),
        bf16(w1f), row(b1f),
        bf16(w2f), row(b2f),
        bf16(w3p), row(b3p),
    )
    return out[:B, :C].astype(jnp.float32)


def init_params(key, din, num_features=128, hidden1=512, hidden2=256,
                num_classes=65):
    """Deterministic synthetic parameters (shapes mirror CombinedModel.__init__)."""
    ks = jax.random.split(key, 12)

    def lin(k, fan_in, fan_out):
        kw, kb = jax.random.split(k)
        lim = 1.0 / jnp.sqrt(fan_in)
        w = jax.random.uniform(kw, (fan_in, fan_out), jnp.float32, -lim, lim)
        b = jax.random.uniform(kb, (fan_out,), jnp.float32, -lim, lim)
        return w, b

    # synthetic Backbone: Flatten -> Linear(din, num_features) -> ReLU
    wb, bb = lin(ks[0], din, num_features)
    # fc1 / bn1
    w1, b1 = lin(ks[1], num_features, hidden1)
    g1 = 1.0 + 0.1 * jax.random.normal(ks[2], (hidden1,), jnp.float32)
    be1 = 0.1 * jax.random.normal(ks[3], (hidden1,), jnp.float32)
    m1 = 0.1 * jax.random.normal(ks[4], (hidden1,), jnp.float32)
    v1 = jnp.abs(jax.random.normal(ks[5], (hidden1,), jnp.float32)) + 0.5
    # fc2 / bn2
    w2, b2 = lin(ks[6], hidden1, hidden2)
    g2 = 1.0 + 0.1 * jax.random.normal(ks[7], (hidden2,), jnp.float32)
    be2 = 0.1 * jax.random.normal(ks[8], (hidden2,), jnp.float32)
    m2 = 0.1 * jax.random.normal(ks[9], (hidden2,), jnp.float32)
    v2 = jnp.abs(jax.random.normal(ks[10], (hidden2,), jnp.float32)) + 0.5
    # fc3
    w3, b3 = lin(ks[11], hidden2, num_classes)

    return (wb, bb, w1, b1, g1, be1, m1, v1,
            w2, b2, g2, be2, m2, v2, w3, b3)


def reference_forward(x_nchw, params):
    """Pure-JAX f32 reference (same eval-mode math) for a sanity check."""
    (wb, bb, w1, b1, g1, be1, m1, v1,
     w2, b2, g2, be2, m2, v2, w3, b3) = params
    eps = 1e-5
    x = x_nchw.reshape(x_nchw.shape[0], -1)
    f = jnp.maximum(x @ wb + bb, 0.0)
    h1 = f @ w1 + b1
    h1 = jnp.maximum(g1 * (h1 - m1) / jnp.sqrt(v1 + eps) + be1, 0.0)
    h2 = h1 @ w2 + b2
    h2 = jnp.maximum(g2 * (h2 - m2) / jnp.sqrt(v2 + eps) + be2, 0.0)
    return h2 @ w3 + b3


if __name__ == "__main__":
    B, C, H, W = 2, 4, 16, 16
    din = C * H * W

    key = jax.random.PRNGKey(0)
    kx, kp = jax.random.split(key)
    x = jax.random.normal(kx, (B, C, H, W), jnp.float32)
    params = init_params(kp, din)

    out = combined_model_forward(x, params)
    out = jax.block_until_ready(out)

    ref = reference_forward(x, params)
    assert out.shape == (B, 65), out.shape
    # bf16 matmul operands / activations / logit store (f32 accumulation)
    # -> compare with a looser tolerance.
    assert jnp.allclose(out, ref, atol=5e-2, rtol=5e-2), "mismatch vs reference"

    print("KERNEL_OK")
</pallas_src>

<mosaic_0001>
module attributes {stable_mosaic.version = 11 : i64} {
  func.func @combined_model_kernel(%arg0: i32, %arg1: memref<16x1024xf32, #tpu.memory_space<vmem>>, %arg2: memref<1024x128xbf16, #tpu.memory_space<vmem>>, %arg3: memref<1x128xf32, #tpu.memory_space<vmem>>, %arg4: memref<128x512xbf16, #tpu.memory_space<vmem>>, %arg5: memref<1x512xf32, #tpu.memory_space<vmem>>, %arg6: memref<512x256xbf16, #tpu.memory_space<vmem>>, %arg7: memref<1x256xf32, #tpu.memory_space<vmem>>, %arg8: memref<256x128xbf16, #tpu.memory_space<vmem>>, %arg9: memref<1x128xf32, #tpu.memory_space<vmem>>, %arg10: memref<16x128xbf16, #tpu.memory_space<vmem>>) attributes {dimension_semantics = [#tpu.dimension_semantics<parallel>], iteration_bounds = array<i64: 1>, scalar_prefetch = 0 : i64, scratch_operands = 0 : i64, tpu.core_type = #tpu.core_type<tc>, window_params = [{transform_indices = @transform_0, window_bounds = array<i64: 16, 1024>}, {pipeline_mode = #tpu.pipeline_mode<synchronous>, transform_indices = @transform_1, window_bounds = array<i64: 1024, 128>}, {pipeline_mode = #tpu.pipeline_mode<synchronous>, transform_indices = @transform_2, window_bounds = array<i64: 1, 128>}, {pipeline_mode = #tpu.pipeline_mode<synchronous>, transform_indices = @transform_3, window_bounds = array<i64: 128, 512>}, {pipeline_mode = #tpu.pipeline_mode<synchronous>, transform_indices = @transform_4, window_bounds = array<i64: 1, 512>}, {pipeline_mode = #tpu.pipeline_mode<synchronous>, transform_indices = @transform_5, window_bounds = array<i64: 512, 256>}, {pipeline_mode = #tpu.pipeline_mode<synchronous>, transform_indices = @transform_6, window_bounds = array<i64: 1, 256>}, {pipeline_mode = #tpu.pipeline_mode<synchronous>, transform_indices = @transform_7, window_bounds = array<i64: 256, 128>}, {pipeline_mode = #tpu.pipeline_mode<synchronous>, transform_indices = @transform_8, window_bounds = array<i64: 1, 128>}, {transform_indices = @transform_9, window_bounds = array<i64: 16, 128>}]} {
    %c0 = arith.constant 0 : index
    %c0_0 = arith.constant 0 : index
    %0 = vector.load %arg1[%c0, %c0_0] : memref<16x1024xf32, #tpu.memory_space<vmem>>, vector<16x1024xf32>
    %1 = arith.truncf %0 : vector<16x1024xf32> to vector<16x1024xbf16>
    %c0_1 = arith.constant 0 : index
    %c0_2 = arith.constant 0 : index
    %2 = vector.load %arg2[%c0_1, %c0_2] : memref<1024x128xbf16, #tpu.memory_space<vmem>>, vector<1024x128xbf16>
    %cst = arith.constant dense<0.000000e+00> : vector<16x128xf32>
    %3 = tpu.matmul %1, %2, %cst {dimension_numbers = #tpu.dot_dimension_numbers<[1], [0], [0], [1], [0, 0, 1, 1], [], []>} : vector<16x1024xbf16>, vector<1024x128xbf16>, vector<16x128xf32> -> vector<16x128xf32>
    %c0_3 = arith.constant 0 : index
    %c0_4 = arith.constant 0 : index
    %4 = vector.load %arg3[%c0_3, %c0_4] : memref<1x128xf32, #tpu.memory_space<vmem>>, vector<1x128xf32>
    %5 = vector.broadcast %4 : vector<1x128xf32> to vector<16x128xf32>
    %6 = arith.addf %3, %5 : vector<16x128xf32>
    %cst_5 = arith.constant 0.000000e+00 : f32
    %7 = vector.broadcast %cst_5 : f32 to vector<16x128xf32>
    %8 = arith.maximumf %6, %7 : vector<16x128xf32>
    %9 = arith.truncf %8 : vector<16x128xf32> to vector<16x128xbf16>
    %c0_6 = arith.constant 0 : index
    %c0_7 = arith.constant 0 : index
    %10 = vector.load %arg4[%c0_6, %c0_7] : memref<128x512xbf16, #tpu.memory_space<vmem>>, vector<128x512xbf16>
    %cst_8 = arith.constant dense<0.000000e+00> : vector<16x512xf32>
    %11 = tpu.matmul %9, %10, %cst_8 {dimension_numbers = #tpu.dot_dimension_numbers<[1], [0], [0], [1], [0, 0, 1, 1], [], []>} : vector<16x128xbf16>, vector<128x512xbf16>, vector<16x512xf32> -> vector<16x512xf32>
    %c0_9 = arith.constant 0 : index
    %c0_10 = arith.constant 0 : index
    %12 = vector.load %arg5[%c0_9, %c0_10] : memref<1x512xf32, #tpu.memory_space<vmem>>, vector<1x512xf32>
    %13 = vector.broadcast %12 : vector<1x512xf32> to vector<16x512xf32>
    %14 = arith.addf %11, %13 : vector<16x512xf32>
    %cst_11 = arith.constant 0.000000e+00 : f32
    %15 = vector.broadcast %cst_11 : f32 to vector<16x512xf32>
    %16 = arith.maximumf %14, %15 : vector<16x512xf32>
    %17 = arith.truncf %16 : vector<16x512xf32> to vector<16x512xbf16>
    %c0_12 = arith.constant 0 : index
    %c0_13 = arith.constant 0 : index
    %18 = vector.load %arg6[%c0_12, %c0_13] : memref<512x256xbf16, #tpu.memory_space<vmem>>, vector<512x256xbf16>
    %cst_14 = arith.constant dense<0.000000e+00> : vector<16x256xf32>
    %19 = tpu.matmul %17, %18, %cst_14 {dimension_numbers = #tpu.dot_dimension_numbers<[1], [0], [0], [1], [0, 0, 1, 1], [], []>} : vector<16x512xbf16>, vector<512x256xbf16>, vector<16x256xf32> -> vector<16x256xf32>
    %c0_15 = arith.constant 0 : index
    %c0_16 = arith.constant 0 : index
    %20 = vector.load %arg7[%c0_15, %c0_16] : memref<1x256xf32, #tpu.memory_space<vmem>>, vector<1x256xf32>
    %21 = vector.broadcast %20 : vector<1x256xf32> to vector<16x256xf32>
    %22 = arith.addf %19, %21 : vector<16x256xf32>
    %cst_17 = arith.constant 0.000000e+00 : f32
    %23 = vector.broadcast %cst_17 : f32 to vector<16x256xf32>
    %24 = arith.maximumf %22, %23 : vector<16x256xf32>
    %25 = arith.truncf %24 : vector<16x256xf32> to vector<16x256xbf16>
    %c0_18 = arith.constant 0 : index
    %c0_19 = arith.constant 0 : index
    %26 = vector.load %arg8[%c0_18, %c0_19] : memref<256x128xbf16, #tpu.memory_space<vmem>>, vector<256x128xbf16>
    %cst_20 = arith.constant dense<0.000000e+00> : vector<16x128xf32>
    %27 = tpu.matmul %25, %26, %cst_20 {dimension_numbers = #tpu.dot_dimension_numbers<[1], [0], [0], [1], [0, 0, 1, 1], [], []>} : vector<16x256xbf16>, vector<256x128xbf16>, vector<16x128xf32> -> vector<16x128xf32>
    %c0_21 = arith.constant 0 : index
    %c0_22 = arith.constant 0 : index
    %28 = vector.load %arg9[%c0_21, %c0_22] : memref<1x128xf32, #tpu.memory_space<vmem>>, vector<1x128xf32>
    %29 = vector.broadcast %28 : vector<1x128xf32> to vector<16x128xf32>
    %30 = arith.addf %27, %29 : vector<16x128xf32>
    %31 = arith.truncf %30 : vector<16x128xf32> to vector<16x128xbf16>
    %c0_23 = arith.constant 0 : index
    %c0_24 = arith.constant 0 : index
    %32 = vector.load %arg10[%c0_23, %c0_24] : memref<16x128xbf16, #tpu.memory_space<vmem>>, vector<16x128xbf16>
    tpu.vector_store %arg10[%c0_23, %c0_24], %31 {strides = array<i32>} : memref<16x128xbf16, #tpu.memory_space<vmem>>, vector<16x128xbf16>,
    return
  }
  func.func @transform_0(%arg0: i32) -> (i32, i32) {
    %c0_i32 = arith.constant 0 : i32
    %c0_i32_0 = arith.constant 0 : i32
    return %arg0, %c0_i32 : i32, i32
  }
  func.func @transform_1(%arg0: i32) -> (i32, i32) {
    %c0_i32 = arith.constant 0 : i32
    %c0_i32_0 = arith.constant 0 : i32
    %c0_i32_1 = arith.constant 0 : i32
    return %c0_i32, %c0_i32_0 : i32, i32
  }
  func.func @transform_2(%arg0: i32) -> (i32, i32) {
    %c0_i32 = arith.constant 0 : i32
    %c0_i32_0 = arith.constant 0 : i32
    %c0_i32_1 = arith.constant 0 : i32
    return %c0_i32, %c0_i32_0 : i32, i32
  }
  func.func @transform_3(%arg0: i32) -> (i32, i32) {
    %c0_i32 = arith.constant 0 : i32
    %c0_i32_0 = arith.constant 0 : i32
    %c0_i32_1 = arith.constant 0 : i32
    return %c0_i32, %c0_i32_0 : i32, i32
  }
  func.func @transform_4(%arg0: i32) -> (i32, i32) {
    %c0_i32 = arith.constant 0 : i32
    %c0_i32_0 = arith.constant 0 : i32
    %c0_i32_1 = arith.constant 0 : i32
    return %c0_i32, %c0_i32_0 : i32, i32
  }
  func.func @transform_5(%arg0: i32) -> (i32, i32) {
    %c0_i32 = arith.constant 0 : i32
    %c0_i32_0 = arith.constant 0 : i32
    %c0_i32_1 = arith.constant 0 : i32
    return %c0_i32, %c0_i32_0 : i32, i32
  }
  func.func @transform_6(%arg0: i32) -> (i32, i32) {
    %c0_i32 = arith.constant 0 : i32
    %c0_i32_0 = arith.constant 0 : i32
    %c0_i32_1 = arith.constant 0 : i32
    return %c0_i32, %c0_i32_0 : i32, i32
  }
  func.func @transform_7(%arg0: i32) -> (i32, i32) {
    %c0_i32 = arith.constant 0 : i32
    %c0_i32_0 = arith.constant 0 : i32
    %c0_i32_1 = arith.constant 0 : i32
    return %c0_i32, %c0_i32_0 : i32, i32
  }
  func.func @transform_8(%arg0: i32) -> (i32, i32) {
    %c0_i32 = arith.constant 0 : i32
    %c0_i32_0 = arith.constant 0 : i32
    %c0_i32_1 = arith.constant 0 : i32
    return %c0_i32, %c0_i32_0 : i32, i32
  }
  func.func @transform_9(%arg0: i32) -> (i32, i32) {
    %c0_i32 = arith.constant 0 : i32
    %c0_i32_0 = arith.constant 0 : i32
    return %arg0, %c0_i32 : i32, i32
  }
}

</mosaic_0001>

<bundles_post_ra>
// kernel: combined_model_forward.1
= control target key start
LH: loop header
LB: loop body
LE: loop exit
PB: predicated region body
PF: predicated region fallthrough
CT: control target
= control target key end

     0   :  { %s2911_s1 = inlined_call_operand.vmem [shape: bf16[1024,128], index: 1, kind: input, shape index: {}]   ;;  %s2912_s0 = inlined_call_operand.vmem [shape: f32[16,1024], index: 0, kind: input, shape index: {}]   ;;  %s2913_s3 = inlined_call_operand.vmem [shape: bf16[128,512], index: 3, kind: input, shape index: {}]   ;;  %s2914_s5 = inlined_call_operand.vmem [shape: bf16[512,256], index: 5, kind: input, shape index: {}]   ;;  %s2915_s2 = inlined_call_operand.vmem [shape: f32[1,128], index: 2, kind: input, shape index: {}]   ;;  %s2916_s7 = inlined_call_operand.vmem [shape: bf16[256,128], index: 7, kind: input, shape index: {}]   ;;  %s2917_s4 = inlined_call_operand.vmem [shape: f32[1,512], index: 4, kind: input, shape index: {}]   ;;  %s2918_s6 = inlined_call_operand.vmem [shape: f32[1,256], index: 6, kind: input, shape index: {}]   ;;  %s2919_s8 = inlined_call_operand.vmem [shape: f32[1,128], index: 8, kind: input, shape index: {}]   ;;  %s2920_s9 = inlined_call_operand.vmem [shape: bf16[16,128], index: 9, kind: output, shape index: {}]  }
   0x1   :  { %v2031_v0 = vld [vmem:[%s2911_s1 + $0x78] sm:$0xff]   ;;  %v2035_v4 = vld [vmem:[%s2911_s1 + $0x70] sm:$0xff]   ;;  %v2039_v8 = vld [vmem:[%s2911_s1 + $0x68] sm:$0xff]  }
   0x2   :  { %v2032_v1 = vld [vmem:[%s2911_s1 + $0xf8] sm:$0xff]   ;;  %1920 = vmatprep.subr.bf16.mxu0 %v2031_v0  ;;  %v2036_v5 = vld [vmem:[%s2911_s1 + $0xf0] sm:$0xff]   ;;  %v2040_v9 = vld [vmem:[%s2911_s1 + $0xe8] sm:$0xff]  }
   0x3   :  { %v2033_v2 = vld [vmem:[%s2911_s1 + $0x38] sm:$0xff]   ;;  %1942 = vmatprep.subr.bf16.mxu1 %v2032_v1  ;;  %v2037_v6 = vld [vmem:[%s2911_s1 + $0x30] sm:$0xff]   ;;  %v2041_v10 = vld [vmem:[%s2911_s1 + $0x28] sm:$0xff]  }
   0x4   :  { %v2034_v3 = vld [vmem:[%s2911_s1 + $0xb8] sm:$0xff]   ;;  %1921 = vmatpush3.bf16.msra.mxu0 %v2033_v2  ;;  %v2038_v7 = vld [vmem:[%s2911_s1 + $0xb0] sm:$0xff]   ;;  %v2042_v11 = vld [vmem:[%s2911_s1 + $0xa8] sm:$0xff]  }
   0x5   :  { %1943 = vmatpush3.bf16.msra.mxu1 %v2034_v3  ;;  %1922 = vmatprep.subr.bf16.mxu0 %v2035_v4  ;;  %v2043_v12 = vld [vmem:[%s2911_s1 + $0x60] sm:$0xff]   ;;  %v2047_v16 = vld [vmem:[%s2911_s1 + $0x58] sm:$0xff]   ;;  %v2051_v20 = vld [vmem:[%s2911_s1 + $0x50] sm:$0xff]  }
   0x6   :  { %1944 = vmatprep.subr.bf16.mxu1 %v2036_v5  ;;  %v2044_v13 = vld [vmem:[%s2911_s1 + $0xe0] sm:$0xff]   ;;  %v2048_v17 = vld [vmem:[%s2911_s1 + $0xd8] sm:$0xff]   ;;  %v2052_v21 = vld [vmem:[%s2911_s1 + $0xd0] sm:$0xff]  }
   0x7   :  { %v2045_v14 = vld [vmem:[%s2911_s1 + $0x20] sm:$0xff]   ;;  %v2049_v18 = vld [vmem:[%s2911_s1 + $0x18] sm:$0xff]   ;;  %v2053_v22 = vld [vmem:[%s2911_s1 + $0x10] sm:$0xff]  }
   0x8   :  { %1923 = vmatpush3.bf16.msra.mxu0 %v2037_v6  ;;  %v2046_v15 = vld [vmem:[%s2911_s1 + $0xa0] sm:$0xff]   ;;  %v2050_v19 = vld [vmem:[%s2911_s1 + $0x98] sm:$0xff]   ;;  %v2054_v23 = vld [vmem:[%s2911_s1 + $0x90] sm:$0xff]  }
   0x9   :  { %1945 = vmatpush3.bf16.msra.mxu1 %v2038_v7  ;;  %1924 = vmatprep.subr.bf16.mxu0 %v2039_v8  ;;  %v2055_v24 = vld [vmem:[%s2911_s1 + $0x48] sm:$0xff]   ;;  %v2059_v28 = vld [vmem:[%s2911_s1 + $0x40] sm:$0xff]   ;;  %v36_v34 = vld [vmem:[%s2912_s0 + $0x18] sm:$0xff] }
   0xa   :  { %1946 = vmatprep.subr.bf16.mxu1 %v2040_v9  ;;  %v2056_v25 = vld [vmem:[%s2911_s1 + $0xc8] sm:$0xff]   ;;  %v2060_v29 = vld [vmem:[%s2911_s1 + $0xc0] sm:$0xff]   ;;  %v44_v36 = vld [vmem:[%s2912_s0 + $0x58] sm:$0xff] }
   0xb   :  { %v2057_v26 = vld [vmem:[%s2911_s1 + $0x8] sm:$0xff]   ;;  %v2061_v30 = vld [vmem:[%s2911_s1] sm:$0xff]   ;;  %v52_v39 = vpack.c.bf16 %v44_v36, %v36_v34  ;;  %v35_v41 = vld [vmem:[%s2912_s0 + $0x10] sm:$0xff] }
   0xc   :  { %1925 = vmatpush3.bf16.msra.mxu0 %v2041_v10  ;;  %v2058_v27 = vld [vmem:[%s2911_s1 + $0x88] sm:$0xff]   ;;  %v2062_v31 = vld [vmem:[%s2911_s1 + $0x80] sm:$0xff]   ;;  %v43_v42 = vld [vmem:[%s2912_s0 + $0x50] sm:$0xff] }
   0xd   :  { %1947 = vmatpush3.bf16.msra.mxu1 %v2042_v11  ;;  %1926 = vmatprep.subr.bf16.mxu0 %v2043_v12  ;;  %v34_v32 = vld [vmem:[%s2912_s0 + $0x8] sm:$0xff]  ;;  %v33_v37 = vld [vmem:[%s2912_s0] sm:$0xff]  ;;  %v51_v43 = vpack.c.bf16 %v43_v42, %v35_v41  ;;  %v2063_v44 = vld [vmem:[%s2911_s1 + $0x178] sm:$0xff]  }
   0xe   :  { %1948 = vmatprep.subr.bf16.mxu1 %v2044_v13  ;;  %v42_v33 = vld [vmem:[%s2912_s0 + $0x48] sm:$0xff]  ;;  %v41_v38 = vld [vmem:[%s2912_s0 + $0x40] sm:$0xff]  ;;  %649 = vmatprep.mubr.bf16.mxu1 %v52_v39  ;;  %v2064_v45 = vld [vmem:[%s2911_s1 + $0x1f8] sm:$0xff]  }
   0xf   :  { %v50_v35 = vpack.c.bf16 %v42_v33, %v34_v32  ;;  %v49_v40 = vpack.c.bf16 %v41_v38, %v33_v37  ;;  %v2065_v46 = vld [vmem:[%s2911_s1 + $0x138] sm:$0xff]   ;;  %v2067_v48 = vld [vmem:[%s2911_s1 + $0x170] sm:$0xff]   ;;  %v2071_v52 = vld [vmem:[%s2911_s1 + $0x168] sm:$0xff]  }
  0x10   :  { %1927 = vmatpush3.bf16.msra.mxu0 %v2045_v14  ;;  %v2066_v47 = vld [vmem:[%s2911_s1 + $0x1b8] sm:$0xff]   ;;  %v2068_v49 = vld [vmem:[%s2911_s1 + $0x1f0] sm:$0xff]   ;;  %v2072_v53 = vld [vmem:[%s2911_s1 + $0x1e8] sm:$0xff]  }
  0x11   :  { %1949 = vmatpush3.bf16.msra.mxu1 %v2046_v15  ;;  %1928 = vmatprep.subr.bf16.mxu0 %v2047_v16  ;;  %v2069_v50 = vld [vmem:[%s2911_s1 + $0x130] sm:$0xff]   ;;  %v2073_v54 = vld [vmem:[%s2911_s1 + $0x128] sm:$0xff]   ;;  %v2075_v56 = vld [vmem:[%s2911_s1 + $0x160] sm:$0xff]  }
  0x12   :  { %1950 = vmatprep.subr.bf16.mxu1 %v2048_v17  ;;  %608 = vmatprep.mubr.bf16.mxu0 %v50_v35  ;;  %v2070_v51 = vld [vmem:[%s2911_s1 + $0x1b0] sm:$0xff]   ;;  %v2074_v55 = vld [vmem:[%s2911_s1 + $0x1a8] sm:$0xff]   ;;  %v2076_v57 = vld [vmem:[%s2911_s1 + $0x1e0] sm:$0xff]  }
  0x13   :  { %v2077_v58 = vld [vmem:[%s2911_s1 + $0x120] sm:$0xff]   ;;  %v2079_v60 = vld [vmem:[%s2911_s1 + $0x158] sm:$0xff]   ;;  %v2083_v0 = vld [vmem:[%s2911_s1 + $0x150] sm:$0xff]  }
  0x14   :  { %1929 = vmatpush3.bf16.msra.mxu0 %v2049_v18  ;;  %v2078_v59 = vld [vmem:[%s2911_s1 + $0x1a0] sm:$0xff]   ;;  %v2080_v61 = vld [vmem:[%s2911_s1 + $0x1d8] sm:$0xff]   ;;  %v2084_v1 = vld [vmem:[%s2911_s1 + $0x1d0] sm:$0xff]  }
  0x15   :  { %1951 = vmatpush3.bf16.msra.mxu1 %v2050_v19  ;;  %1930 = vmatprep.subr.bf16.mxu0 %v2051_v20  ;;  %v2081_v62 = vld [vmem:[%s2911_s1 + $0x118] sm:$0xff]   ;;  %v2085_v2 = vld [vmem:[%s2911_s1 + $0x110] sm:$0xff]   ;;  %v2087_v4 = vld [vmem:[%s2911_s1 + $0x148] sm:$0xff]  }
  0x16   :  { %1952 = vmatprep.subr.bf16.mxu1 %v2052_v21  ;;  %v2082_v63 = vld [vmem:[%s2911_s1 + $0x198] sm:$0xff]   ;;  %v2086_v3 = vld [vmem:[%s2911_s1 + $0x190] sm:$0xff]   ;;  %v2088_v5 = vld [vmem:[%s2911_s1 + $0x1c8] sm:$0xff]  }
  0x17   :  { %v2089_v6 = vld [vmem:[%s2911_s1 + $0x108] sm:$0xff]   ;;  %v2091_v8 = vld [vmem:[%s2911_s1 + $0x140] sm:$0xff]   ;;  %v40_v14 = vld [vmem:[%s2912_s0 + $0x38] sm:$0xff] }
  0x18   :  { %1931 = vmatpush3.bf16.msra.mxu0 %v2053_v22  ;;  %v2090_v7 = vld [vmem:[%s2911_s1 + $0x188] sm:$0xff]   ;;  %v2092_v9 = vld [vmem:[%s2911_s1 + $0x1c0] sm:$0xff]   ;;  %v48_v15 = vld [vmem:[%s2912_s0 + $0x78] sm:$0xff] }
  0x19   :  { %1953 = vmatpush3.bf16.msra.mxu1 %v2054_v23  ;;  %1932 = vmatprep.subr.bf16.mxu0 %v2055_v24  ;;  %v2093_v10 = vld [vmem:[%s2911_s1 + $0x100] sm:$0xff]   ;;  %v38_v12 = vld [vmem:[%s2912_s0 + $0x28] sm:$0xff]  ;;  %v56_v17 = vpack.c.bf16 %v48_v15, %v40_v14  ;;  %v39_v20 = vld [vmem:[%s2912_s0 + $0x30] sm:$0xff] }
  0x1a   :  { %1954 = vmatprep.subr.bf16.mxu1 %v2056_v25  ;;  %v2094_v11 = vld [vmem:[%s2911_s1 + $0x180] sm:$0xff]   ;;  %v46_v13 = vld [vmem:[%s2912_s0 + $0x68] sm:$0xff]  ;;  %v47_v22 = vld [vmem:[%s2912_s0 + $0x70] sm:$0xff] }
  0x1b   :  { %v54_v16 = vpack.c.bf16 %v46_v13, %v38_v12  ;;  %v37_v18 = vld [vmem:[%s2912_s0 + $0x20] sm:$0xff]  ;;  %v55_v23 = vpack.c.bf16 %v47_v22, %v39_v20  ;;  %v2112_v34 = vld [vmem:[%s2913_s3 + $0xac] ss:$16 sps:$4 sm:$0xff]   ;;  %v2110_v35 = vld [vmem:[%s2913_s3 + $0xa8] ss:$16 sps:$4 sm:$0xff]  }
  0x1c   :  { %1933 = vmatpush3.bf16.msra.mxu0 %v2057_v26  ;;  %v45_v19 = vld [vmem:[%s2912_s0 + $0x60] sm:$0xff]  ;;  %v2098_v26 = vld [vmem:[%s2913_s3 + $0xe8] ss:$16 sps:$4 sm:$0xff]   ;;  %v2118_v38 = vld [vmem:[%s2913_s3 + $0x8c] ss:$16 sps:$4 sm:$0xff]  }
  0x1d   :  { %1955 = vmatpush3.bf16.msra.mxu1 %v2058_v27  ;;  %1934 = vmatprep.subr.bf16.mxu0 %v2059_v28  ;;  %v53_v21 = vpack.c.bf16 %v45_v19, %v37_v18  ;;  %v2095_v24 = vld [vmem:[%s2913_s3 + $0xe0] ss:$16 sps:$4 sm:$0xff]   ;;  %v2097_v25 = vld [vmem:[%s2913_s3 + $0xe4] ss:$16 sps:$4 sm:$0xff]   ;;  %v2100_v27 = vld [vmem:[%s2913_s3 + $0xec] ss:$16 sps:$4 sm:$0xff]  }
  0x1e   :  { %1956 = vmatprep.subr.bf16.mxu1 %v2060_v29  ;;  %v2101_v28 = vld [vmem:[%s2913_s3 + $0xc0] ss:$16 sps:$4 sm:$0xff]   ;;  %v2103_v29 = vld [vmem:[%s2913_s3 + $0xc4] ss:$16 sps:$4 sm:$0xff]   ;;  %v2116_v39 = vld [vmem:[%s2913_s3 + $0x88] ss:$16 sps:$4 sm:$0xff]  }
  0x1f   :  { %v2109_v32 = vld [vmem:[%s2913_s3 + $0xa4] ss:$16 sps:$4 sm:$0xff]   ;;  %v2107_v33 = vld [vmem:[%s2913_s3 + $0xa0] ss:$16 sps:$4 sm:$0xff]   ;;  %v2124_v41 = vld [vmem:[%s2913_s3 + $0x6c] ss:$16 sps:$4 sm:$0xff]  }
  0x20   :  { %1935 = vmatpush3.bf16.msra.mxu0 %v2061_v30  ;;  %v2104_v30 = vld [vmem:[%s2913_s3 + $0xc8] ss:$16 sps:$4 sm:$0xff]   ;;  %v2115_v36 = vld [vmem:[%s2913_s3 + $0x84] ss:$16 sps:$4 sm:$0xff]   ;;  %v2113_v37 = vld [vmem:[%s2913_s3 + $0x80] ss:$16 sps:$4 sm:$0xff]  }
  0x21   :  { %1957 = vmatpush3.bf16.msra.mxu1 %v2062_v31  ;;  %1964 = vmatprep.subr.bf16.mxu0 %v2063_v44  ;;  %v2106_v31 = vld [vmem:[%s2913_s3 + $0xcc] ss:$16 sps:$4 sm:$0xff]   ;;  %v2119_v42 = vld [vmem:[%s2913_s3 + $0x60] ss:$16 sps:$4 sm:$0xff]   ;;  %v2127_v44 = vld [vmem:[%s2913_s3 + $0x44] ss:$16 sps:$4 sm:$0xff]  }
  0x22   :  { %1986 = vmatprep.subr.bf16.mxu1 %v2064_v45  ;;  %v2130_v45 = vld [vmem:[%s2913_s3 + $0x4c] ss:$16 sps:$4 sm:$0xff]  }
  0x23   :  { %609 = vmatmul.mubr.bf16.vlgmr.msra.gmra.mxu0 %v49_v40  ;;  %v2121_v40 = vld [vmem:[%s2913_s3 + $0x64] ss:$16 sps:$4 sm:$0xff]  }
  0x24   :  { %650 = vmatmul.mubr.bf16.vlgmr.msra.gmra.mxu1 %v51_v43  ;;  %1965 = vmatpush3.bf16.msra.mxu0 %v2065_v46  ;;  %v2122_v43 = vld [vmem:[%s2913_s3 + $0x68] ss:$16 sps:$4 sm:$0xff]   ;;  %v2125_v46 = vld [vmem:[%s2913_s3 + $0x40] ss:$16 sps:$4 sm:$0xff]  }
  0x25   :  { %1987 = vmatpush3.bf16.msra.mxu1 %v2066_v47  ;;  %1966 = vmatprep.subr.bf16.mxu0 %v2067_v48  ;;  %v2128_v47 = vld [vmem:[%s2913_s3 + $0x48] ss:$16 sps:$4 sm:$0xff]   ;;  %v2133_v48 = vld [vmem:[%s2913_s3 + $0x24] ss:$16 sps:$4 sm:$0xff]  }
  0x26   :  { %1988 = vmatprep.subr.bf16.mxu1 %v2068_v49  ;;  %690 = vmatprep.mubr.bf16.mxu0 %v54_v16  ;;  %v2136_v49 = vld [vmem:[%s2913_s3 + $0x2c] ss:$16 sps:$4 sm:$0xff]  }
  0x27   :  { %731 = vmatprep.mubr.bf16.mxu1 %v56_v17 }
  0x28   :  { %1967 = vmatpush3.bf16.msra.mxu0 %v2069_v50  ;;  %v2131_v50 = vld [vmem:[%s2913_s3 + $0x20] ss:$16 sps:$4 sm:$0xff]  }
  0x29   :  { %1989 = vmatpush3.bf16.msra.mxu1 %v2070_v51  ;;  %1968 = vmatprep.subr.bf16.mxu0 %v2071_v52  ;;  %v2134_v51 = vld [vmem:[%s2913_s3 + $0x28] ss:$16 sps:$4 sm:$0xff]   ;;  %v2139_v52 = vld [vmem:[%s2913_s3 + $0x4] ss:$16 sps:$4 sm:$0xff]  }
  0x2a   :  { %1990 = vmatprep.subr.bf16.mxu1 %v2072_v53  ;;  %v2142_v53 = vld [vmem:[%s2913_s3 + $0xc] ss:$16 sps:$4 sm:$0xff]  }
  0x2c   :  { %1969 = vmatpush3.bf16.msra.mxu0 %v2073_v54  ;;  %v2137_v54 = vld [vmem:[%s2913_s3] ss:$16 sps:$4 sm:$0xff]  }
  0x2d   :  { %1991 = vmatpush3.bf16.msra.mxu1 %v2074_v55  ;;  %1970 = vmatprep.subr.bf16.mxu0 %v2075_v56  ;;  %v2140_v55 = vld [vmem:[%s2913_s3 + $0x8] ss:$16 sps:$4 sm:$0xff]   ;;  %v2255_v56 = vmov 0  }
  0x2e   :  { %1992 = vmatprep.subr.bf16.mxu1 %v2076_v57  ;;  %v2145_v57 = vld [vmem:[%s2914_s5 + $0x74] ss:$8 sps:$4 sm:$0xff]  }
  0x30   :  { %1971 = vmatpush3.bf16.msra.mxu0 %v2077_v58  ;;  %v2148_v58 = vld [vmem:[%s2914_s5 + $0x174] ss:$8 sps:$4 sm:$0xff]  }
  0x31   :  { %1993 = vmatpush3.bf16.msra.mxu1 %v2078_v59  ;;  %1972 = vmatprep.subr.bf16.mxu0 %v2079_v60 }
  0x32   :  { %1994 = vmatprep.subr.bf16.mxu1 %v2080_v61 }
  0x34   :  { %1973 = vmatpush3.bf16.msra.mxu0 %v2081_v62 }
  0x35   :  { %1995 = vmatpush3.bf16.msra.mxu1 %v2082_v63  ;;  %1974 = vmatprep.subr.bf16.mxu0 %v2083_v0 }
  0x36   :  { %1996 = vmatprep.subr.bf16.mxu1 %v2084_v1 }
  0x38   :  { %1975 = vmatpush3.bf16.msra.mxu0 %v2085_v2  ;;  %v1733_v2 = vld [vmem:[%s2915_s2] ss:$0 sm:$0xff] }
  0x39   :  { %1997 = vmatpush3.bf16.msra.mxu1 %v2086_v3  ;;  %1976 = vmatprep.subr.bf16.mxu0 %v2087_v4 }
  0x3a   :  { %1998 = vmatprep.subr.bf16.mxu1 %v2088_v5 }
  0x3c   :  { %1977 = vmatpush3.bf16.msra.mxu0 %v2089_v6 }
  0x3d   :  { %1999 = vmatpush3.bf16.msra.mxu1 %v2090_v7  ;;  %1978 = vmatprep.subr.bf16.mxu0 %v2091_v8 }
  0x3e   :  { %2000 = vmatprep.subr.bf16.mxu1 %v2092_v9 }
  0x40   :  { %1979 = vmatpush3.bf16.msra.mxu0 %v2093_v10 }
  0x41   :  { %2001 = vmatpush3.bf16.msra.mxu1 %v2094_v11  ;;  %957 = vmatprep.subr.bf16.mxu0 %v2097_v25 }
  0x42   :  { %1000 = vmatprep.subr.bf16.mxu1 %v2100_v27 }
  0x43   :  { %691 = vmatmul.mubr.bf16.vlgmr.msra.gmra.mxu0 %v53_v21 }
  0x44   :  { %732 = vmatmul.mubr.bf16.vlgmr.msra.gmra.mxu1 %v55_v23  ;;  %958 = vmatpush1.bf16.msra.mxu0 %v2095_v24 }
  0x45   :  { %1001 = vmatpush1.bf16.msra.mxu1 %v2098_v26  ;;  %959 = vmatprep.subr.bf16.mxu0 %v2103_v29 }
  0x46   :  { %1002 = vmatprep.subr.bf16.mxu1 %v2106_v31  ;;  %989 = vmatprep.mubr.bf16.mxu0 %v2255_v56  ;;  %v2146_v31 = vld [vmem:[%s2914_s5 + $0x170] ss:$8 sps:$4 sm:$0xff]  }
  0x47   :  { %1032 = vmatprep.mubr.bf16.mxu1 %v2255_v56  ;;  %v2182_v56 = vld [vmem:[%s2914_s5 + $0x110] ss:$8 sps:$4 sm:$0xff]  }
  0x48   :  { %960 = vmatpush1.bf16.msra.mxu0 %v2101_v28 }
  0x49   :  { %1003 = vmatpush1.bf16.msra.mxu1 %v2104_v30  ;;  %961 = vmatprep.subr.bf16.mxu0 %v2109_v32  ;;  %v2143_v30 = vld [vmem:[%s2914_s5 + $0x70] ss:$8 sps:$4 sm:$0xff]  }
  0x4a   :  { %1004 = vmatprep.subr.bf16.mxu1 %v2112_v34  ;;  %v2154_v34 = vld [vmem:[%s2914_s5 + $0x164] ss:$8 sps:$4 sm:$0xff]  }
  0x4c   :  { %962 = vmatpush1.bf16.msra.mxu0 %v2107_v33  ;;  %v2151_v33 = vld [vmem:[%s2914_s5 + $0x64] ss:$8 sps:$4 sm:$0xff]  }
  0x4d   :  { %1005 = vmatpush1.bf16.msra.mxu1 %v2110_v35  ;;  %963 = vmatprep.subr.bf16.mxu0 %v2115_v36  ;;  %v2149_v35 = vld [vmem:[%s2914_s5 + $0x60] ss:$8 sps:$4 sm:$0xff]  }
  0x4e   :  { %1006 = vmatprep.subr.bf16.mxu1 %v2118_v38  ;;  %v2152_v36 = vld [vmem:[%s2914_s5 + $0x160] ss:$8 sps:$4 sm:$0xff]   ;;  %v2160_v38 = vld [vmem:[%s2914_s5 + $0x154] ss:$8 sps:$4 sm:$0xff]  }
  0x50   :  { %964 = vmatpush1.bf16.msra.mxu0 %v2113_v37  ;;  %v2157_v37 = vld [vmem:[%s2914_s5 + $0x54] ss:$8 sps:$4 sm:$0xff]  }
  0x51   :  { %1007 = vmatpush1.bf16.msra.mxu1 %v2116_v39  ;;  %965 = vmatprep.subr.bf16.mxu0 %v2121_v40  ;;  %v2155_v39 = vld [vmem:[%s2914_s5 + $0x50] ss:$8 sps:$4 sm:$0xff]  }
  0x52   :  { %1008 = vmatprep.subr.bf16.mxu1 %v2124_v41  ;;  %v2158_v40 = vld [vmem:[%s2914_s5 + $0x150] ss:$8 sps:$4 sm:$0xff]   ;;  %v2163_v41 = vld [vmem:[%s2914_s5 + $0x44] ss:$8 sps:$4 sm:$0xff]  }
  0x54   :  { %966 = vmatpush1.bf16.msra.mxu0 %v2119_v42  ;;  %v2166_v42 = vld [vmem:[%s2914_s5 + $0x144] ss:$8 sps:$4 sm:$0xff]  }
  0x55   :  { %1009 = vmatpush1.bf16.msra.mxu1 %v2122_v43  ;;  %967 = vmatprep.subr.bf16.mxu0 %v2127_v44  ;;  %v2161_v43 = vld [vmem:[%s2914_s5 + $0x40] ss:$8 sps:$4 sm:$0xff]  }
  0x56   :  { %1010 = vmatprep.subr.bf16.mxu1 %v2130_v45  ;;  %v2164_v44 = vld [vmem:[%s2914_s5 + $0x140] ss:$8 sps:$4 sm:$0xff]   ;;  %v2169_v45 = vld [vmem:[%s2914_s5 + $0x34] ss:$8 sps:$4 sm:$0xff]  }
  0x58   :  { %968 = vmatpush1.bf16.msra.mxu0 %v2125_v46  ;;  %v2172_v46 = vld [vmem:[%s2914_s5 + $0x134] ss:$8 sps:$4 sm:$0xff]  }
  0x59   :  { %1011 = vmatpush1.bf16.msra.mxu1 %v2128_v47  ;;  %969 = vmatprep.subr.bf16.mxu0 %v2133_v48  ;;  %v2167_v47 = vld [vmem:[%s2914_s5 + $0x30] ss:$8 sps:$4 sm:$0xff]  }
  0x5a   :  { %1012 = vmatprep.subr.bf16.mxu1 %v2136_v49  ;;  %v2170_v48 = vld [vmem:[%s2914_s5 + $0x130] ss:$8 sps:$4 sm:$0xff]   ;;  %v2175_v49 = vld [vmem:[%s2914_s5 + $0x24] ss:$8 sps:$4 sm:$0xff]  }
  0x5c   :  { %970 = vmatpush1.bf16.msra.mxu0 %v2131_v50  ;;  %v2178_v50 = vld [vmem:[%s2914_s5 + $0x124] ss:$8 sps:$4 sm:$0xff]  }
  0x5d   :  { %1013 = vmatpush1.bf16.msra.mxu1 %v2134_v51  ;;  %971 = vmatprep.subr.bf16.mxu0 %v2139_v52  ;;  %v2173_v51 = vld [vmem:[%s2914_s5 + $0x20] ss:$8 sps:$4 sm:$0xff]  }
  0x5e   :  { %1014 = vmatprep.subr.bf16.mxu1 %v2142_v53  ;;  %v2176_v52 = vld [vmem:[%s2914_s5 + $0x120] ss:$8 sps:$4 sm:$0xff]   ;;  %v2181_v53 = vld [vmem:[%s2914_s5 + $0x14] ss:$8 sps:$4 sm:$0xff]  }
  0x60   :  { %972 = vmatpush1.bf16.msra.mxu0 %v2137_v54  ;;  %v2184_v54 = vld [vmem:[%s2914_s5 + $0x114] ss:$8 sps:$4 sm:$0xff]  }
  0x61   :  { %1015 = vmatpush1.bf16.msra.mxu1 %v2140_v55  ;;  %1451 = vmatprep.subr.bf16.mxu0 %v2145_v57  ;;  %v2179_v55 = vld [vmem:[%s2914_s5 + $0x10] ss:$8 sps:$4 sm:$0xff]   ;;  %v2187_v57 = vld [vmem:[%s2914_s5 + $0x4] ss:$8 sps:$4 sm:$0xff]  }
  0x62   :  { %1494 = vmatprep.subr.bf16.mxu1 %v2148_v58  ;;  %v2190_v58 = vld [vmem:[%s2914_s5 + $0x104] ss:$8 sps:$4 sm:$0xff]  }
  0xe3   :  { %v1936_v59 = vpop.f32.mrf.mxu0 }
  0xe4   :  { %v1958_v60 = vpop.f32.mrf.mxu1 }
  0xe5   :  { %v1937_v61 = vpop.f32.mrf.mxu0 }
  0xe6   :  { %v1959_v62 = vpop.f32.mrf.mxu1  ;;  %v1938_v0 = vadd.f32 %v1937_v61, %v1936_v59  ;;  %v2185_v59 = vld [vmem:[%s2914_s5] ss:$8 sps:$4 sm:$0xff]   ;;  %v2193_v61 = vld [vmem:[%s2914_s5 + $0xf4] ss:$8 sps:$4 sm:$0xff]  }
  0xe7   :  { %v1939_v63 = vpop.f32.mrf.mxu0  ;;  %v1960_v5 = vadd.f32 %v1959_v62, %v1958_v60  ;;  %v2188_v60 = vld [vmem:[%s2914_s5 + $0x100] ss:$8 sps:$4 sm:$0xff]   ;;  %v2196_v62 = vld [vmem:[%s2914_s5 + $0x1f4] ss:$8 sps:$4 sm:$0xff]  }
  0xe8   :  { %v1961_v1 = vpop.f32.mrf.mxu1  ;;  %v611_v4 = vadd.f32 %v1938_v0, %v1733_v2  ;;  %v2194_v0 = vld [vmem:[%s2914_s5 + $0x1f0] ss:$8 sps:$4 sm:$0xff]  }
  0xe9   :  { %v1940_v3 = vpop.f32.mrf.mxu0 }
  0xea   :  { %v1941_v6 = vadd.f32 %v1940_v3, %v1939_v63  ;;  %v1962_v7 = vpop.f32.mrf.mxu1  ;;  %v652_v11 = vadd.f32 %v1960_v5, %v611_v4  ;;  %v2191_v63 = vld [vmem:[%s2914_s5 + $0xf0] ss:$8 sps:$4 sm:$0xff]   ;;  %v2197_v3 = vld [vmem:[%s2914_s5 + $0xe0] ss:$8 sps:$4 sm:$0xff]   ;;  %v2205_v5 = vld [vmem:[%s2914_s5 + $0xd4] ss:$8 sps:$4 sm:$0xff]  }
  0xeb   :  { %v1963_v16 = vadd.f32 %v1962_v7, %v1961_v1  ;;  %v2199_v1 = vld [vmem:[%s2914_s5 + $0xe4] ss:$8 sps:$4 sm:$0xff]   ;;  %v2200_v4 = vld [vmem:[%s2914_s5 + $0x1e0] ss:$8 sps:$4 sm:$0xff]   ;;  %v2203_v7 = vld [vmem:[%s2914_s5 + $0xd0] ss:$8 sps:$4 sm:$0xff]  }
  0xec   :  { %v614_v12 = vadd.f32 %v1941_v6, %v1733_v2  ;;  %v2202_v2 = vld [vmem:[%s2914_s5 + $0x1e4] ss:$8 sps:$4 sm:$0xff]   ;;  %v2208_v6 = vld [vmem:[%s2914_s5 + $0x1d4] ss:$8 sps:$4 sm:$0xff]  }
  0xee   :  { %v655_v20 = vadd.f32 %v1963_v16, %v614_v12  ;;  %v2212_v12 = vld [vmem:[%s2914_s5 + $0x1c0] ss:$8 sps:$4 sm:$0xff]   ;;  %v2218_v16 = vld [vmem:[%s2914_s5 + $0x1b0] ss:$8 sps:$4 sm:$0xff]  }
 0x103   :  { %v1980_v8 = vpop.f32.mrf.mxu0 }
 0x104   :  { %v2002_v9 = vpop.f32.mrf.mxu1 }
 0x105   :  { %v1981_v10 = vpop.f32.mrf.mxu0 }
 0x106   :  { %v1982_v13 = vadd.f32 %v1981_v10, %v1980_v8  ;;  %v2003_v14 = vpop.f32.mrf.mxu1  ;;  %v2206_v8 = vld [vmem:[%s2914_s5 + $0x1d0] ss:$8 sps:$4 sm:$0xff]   ;;  %v2214_v10 = vld [vmem:[%s2914_s5 + $0x1c4] ss:$8 sps:$4 sm:$0xff]  }
 0x107   :  { %v1983_v15 = vpop.f32.mrf.mxu0  ;;  %v2004_v21 = vadd.f32 %v2003_v14, %v2002_v9  ;;  %v2211_v9 = vld [vmem:[%s2914_s5 + $0xc4] ss:$8 sps:$4 sm:$0xff]   ;;  %v2220_v14 = vld [vmem:[%s2914_s5 + $0x1b4] ss:$8 sps:$4 sm:$0xff]  }
 0x108   :  { %v693_v17 = vadd.f32 %v1982_v13, %v652_v11  ;;  %v2005_v18 = vpop.f32.mrf.mxu1  ;;  %v2209_v11 = vld [vmem:[%s2914_s5 + $0xc0] ss:$8 sps:$4 sm:$0xff]   ;;  %v2217_v13 = vld [vmem:[%s2914_s5 + $0xb4] ss:$8 sps:$4 sm:$0xff]  }
 0x109   :  { %v1984_v19 = vpop.f32.mrf.mxu0 }
 0x10a   :  { %v1985_v22 = vadd.f32 %v1984_v19, %v1983_v15  ;;  %v2006_v23 = vpop.f32.mrf.mxu1  ;;  %v734_v24 = vadd.f32 %v2004_v21, %v693_v17  ;;  %v2215_v15 = vld [vmem:[%s2914_s5 + $0xb0] ss:$8 sps:$4 sm:$0xff]   ;;  %v2223_v17 = vld [vmem:[%s2914_s5 + $0xa4] ss:$8 sps:$4 sm:$0xff]   ;;  %v2221_v19 = vld [vmem:[%s2914_s5 + $0xa0] ss:$8 sps:$4 sm:$0xff]  }
 0x10b   :  { %v2007_v26 = vadd.f32 %v2006_v23, %v2005_v18  ;;  %v2226_v18 = vld [vmem:[%s2914_s5 + $0x1a4] ss:$8 sps:$4 sm:$0xff]   ;;  %v2229_v21 = vld [vmem:[%s2914_s5 + $0x94] ss:$8 sps:$4 sm:$0xff]   ;;  %v2227_v23 = vld [vmem:[%s2914_s5 + $0x90] ss:$8 sps:$4 sm:$0xff]  }
 0x10c   :  { %v696_v25 = vadd.f32 %v1985_v22, %v655_v20  ;;  %v740_v28 = vmax.f32 %v734_v24, 0.0  ;;  %v2224_v20 = vld [vmem:[%s2914_s5 + $0x1a0] ss:$8 sps:$4 sm:$0xff]   ;;  %v2232_v22 = vld [vmem:[%s2914_s5 + $0x194] ss:$8 sps:$4 sm:$0xff]  }
 0x10d   :  { %v2230_v24 = vld [vmem:[%s2914_s5 + $0x190] ss:$8 sps:$4 sm:$0xff]  }
 0x10e   :  { %v737_v27 = vadd.f32 %v2007_v26, %v696_v25  ;;  %v2235_v25 = vld [vmem:[%s2914_s5 + $0x84] ss:$8 sps:$4 sm:$0xff]  }
 0x10f   :  { %v2238_v26 = vld [vmem:[%s2914_s5 + $0x184] ss:$8 sps:$4 sm:$0xff]  }
 0x110   :  { %v741_v29 = vmax.f32 %v737_v27, 0.0  ;;  %v2233_v27 = vld [vmem:[%s2914_s5 + $0x80] ss:$8 sps:$4 sm:$0xff]  }
 0x112   :  { %v742_v32 = vpack.c.bf16 %v741_v29, %v740_v28  ;;  %v2236_v28 = vld [vmem:[%s2914_s5 + $0x180] ss:$8 sps:$4 sm:$0xff]   ;;  %v2239_v29 = vld [vmem:[%s2916_s7 + $0x78] sm:$0xff]  }
 0x114   :  { %990 = vmatmul.mubr.bf16.vlgmr.msra.gmra.mxu0 %v742_v32  ;;  %1033 = vmatmul.mubr.bf16.vlgmr.msra.gmra.mxu1 %v742_v32 }
 0x115   :  { %1452 = vmatpush1.bf16.msra.mxu0 %v2143_v30  ;;  %1495 = vmatpush1.bf16.msra.mxu1 %v2146_v31  ;;  %v777_v30 = vlaneseq }
 0x116   :  { %1453 = vmatprep.subr.bf16.mxu0 %v2151_v33  ;;  %1496 = vmatprep.subr.bf16.mxu1 %v2154_v34 }
 0x117   :  { %v2840_v31 = vshrl.u32 %v777_v30, 7 }
 0x119   :  { %1454 = vmatpush1.bf16.msra.mxu0 %v2149_v35  ;;  %1497 = vmatpush1.bf16.msra.mxu1 %v2152_v36  ;;  %v783_v32 = vsub.s32 1, %v2840_v31  ;;  %v791_v33 = vsub.s32 3, %v2840_v31  ;;  %v779_v34 = vsub.s32 0, %v2840_v31  ;;  %v787_v35 = vsub.s32 2, %v2840_v31  ;;  %v775_v36 = vld [vmem:[%s2917_s4] sm:$0xf] }
 0x11a   :  { %1455 = vmatprep.subr.bf16.mxu0 %v2157_v37  ;;  %1498 = vmatprep.subr.bf16.mxu1 %v2160_v38 }
 0x11d   :  { %1456 = vmatpush1.bf16.msra.mxu0 %v2155_v39  ;;  %1499 = vmatpush1.bf16.msra.mxu1 %v2158_v40  ;;  %v784_v39 = vrot.slane %v775_v36, %v783_v32  ;;  %v792_v40 = vrot.slane %v775_v36, %v791_v33 }
 0x11e   :  { %1457 = vmatprep.subr.bf16.mxu0 %v2163_v41  ;;  %1500 = vmatprep.subr.bf16.mxu1 %v2166_v42  ;;  %v780_v41 = vrot.slane %v775_v36, %v779_v34  ;;  %v788_v42 = vrot.slane %v775_v36, %v787_v35 }
 0x121   :  { %1458 = vmatpush1.bf16.msra.mxu0 %v2161_v43  ;;  %1501 = vmatpush1.bf16.msra.mxu1 %v2164_v44 }
 0x122   :  { %1459 = vmatprep.subr.bf16.mxu0 %v2169_v45  ;;  %1502 = vmatprep.subr.bf16.mxu1 %v2172_v46 }
 0x125   :  { %1460 = vmatpush1.bf16.msra.mxu0 %v2167_v47  ;;  %1503 = vmatpush1.bf16.msra.mxu1 %v2170_v48 }
 0x126   :  { %1461 = vmatprep.subr.bf16.mxu0 %v2175_v49  ;;  %1504 = vmatprep.subr.bf16.mxu1 %v2178_v50 }
 0x129   :  { %1462 = vmatpush1.bf16.msra.mxu0 %v2173_v51  ;;  %1505 = vmatpush1.bf16.msra.mxu1 %v2176_v52 }
 0x12a   :  { %1463 = vmatprep.subr.bf16.mxu0 %v2181_v53  ;;  %1506 = vmatprep.subr.bf16.mxu1 %v2184_v54 }
 0x12d   :  { %1464 = vmatpush1.bf16.msra.mxu0 %v2179_v55  ;;  %1507 = vmatpush1.bf16.msra.mxu1 %v2182_v56 }
 0x12e   :  { %1465 = vmatprep.subr.bf16.mxu0 %v2187_v57  ;;  %1508 = vmatprep.subr.bf16.mxu1 %v2190_v58 }
 0x131   :  { %1466 = vmatpush1.bf16.msra.mxu0 %v2185_v59  ;;  %1509 = vmatpush1.bf16.msra.mxu1 %v2188_v60 }
 0x132   :  { %1467 = vmatprep.subr.bf16.mxu0 %v2193_v61  ;;  %1510 = vmatprep.subr.bf16.mxu1 %v2196_v62 }
 0x135   :  { %1468 = vmatpush2.bf16.msra.mxu0 %v2191_v63  ;;  %1511 = vmatpush2.bf16.msra.mxu1 %v2194_v0 }
 0x136   :  { %1469 = vmatprep.subr.bf16.mxu0 %v2199_v1  ;;  %1512 = vmatprep.subr.bf16.mxu1 %v2202_v2 }
 0x139   :  { %1470 = vmatpush2.bf16.msra.mxu0 %v2197_v3  ;;  %1513 = vmatpush2.bf16.msra.mxu1 %v2200_v4  ;;  %v2240_v3 = vld [vmem:[%s2916_s7 + $0x38] sm:$0xff]  }
 0x13a   :  { %1471 = vmatprep.subr.bf16.mxu0 %v2205_v5  ;;  %1514 = vmatprep.subr.bf16.mxu1 %v2208_v6  ;;  %v2241_v6 = vld [vmem:[%s2916_s7 + $0x70] sm:$0xff]  }
 0x13d   :  { %1472 = vmatpush2.bf16.msra.mxu0 %v2203_v7  ;;  %1515 = vmatpush2.bf16.msra.mxu1 %v2206_v8  ;;  %v2242_v7 = vld [vmem:[%s2916_s7 + $0x30] sm:$0xff]   ;;  %v2243_v8 = vld [vmem:[%s2916_s7 + $0x68] sm:$0xff]  }
 0x13e   :  { %1473 = vmatprep.subr.bf16.mxu0 %v2211_v9  ;;  %1516 = vmatprep.subr.bf16.mxu1 %v2214_v10  ;;  %v2244_v9 = vld [vmem:[%s2916_s7 + $0x28] sm:$0xff]   ;;  %v2245_v10 = vld [vmem:[%s2916_s7 + $0x60] sm:$0xff]  }
 0x141   :  { %1474 = vmatpush2.bf16.msra.mxu0 %v2209_v11  ;;  %1517 = vmatpush2.bf16.msra.mxu1 %v2212_v12  ;;  %v2246_v11 = vld [vmem:[%s2916_s7 + $0x20] sm:$0xff]   ;;  %v2247_v12 = vld [vmem:[%s2916_s7 + $0x58] sm:$0xff]  }
 0x142   :  { %1475 = vmatprep.subr.bf16.mxu0 %v2217_v13  ;;  %1518 = vmatprep.subr.bf16.mxu1 %v2220_v14  ;;  %v2248_v13 = vld [vmem:[%s2916_s7 + $0x18] sm:$0xff]   ;;  %v2249_v14 = vld [vmem:[%s2916_s7 + $0x50] sm:$0xff]  }
 0x145   :  { %1476 = vmatpush2.bf16.msra.mxu0 %v2215_v15  ;;  %1519 = vmatpush2.bf16.msra.mxu1 %v2218_v16  ;;  %v2250_v15 = vld [vmem:[%s2916_s7 + $0x10] sm:$0xff]   ;;  %v2251_v16 = vld [vmem:[%s2916_s7 + $0x48] sm:$0xff]  }
 0x146   :  { %1477 = vmatprep.subr.bf16.mxu0 %v2223_v17  ;;  %1520 = vmatprep.subr.bf16.mxu1 %v2226_v18  ;;  %v2252_v17 = vld [vmem:[%s2916_s7 + $0x8] sm:$0xff]   ;;  %v2253_v18 = vld [vmem:[%s2916_s7 + $0x40] sm:$0xff]  }
 0x149   :  { %1478 = vmatpush2.bf16.msra.mxu0 %v2221_v19  ;;  %1521 = vmatpush2.bf16.msra.mxu1 %v2224_v20  ;;  %v2254_v19 = vld [vmem:[%s2916_s7] sm:$0xff]  }
 0x14a   :  { %1479 = vmatprep.subr.bf16.mxu0 %v2229_v21  ;;  %1522 = vmatprep.subr.bf16.mxu1 %v2232_v22  ;;  %v1119_v20 = vld [vmem:[%s2918_s6] sm:$0x3] }
 0x14b   :  { %v1128_v21 = vrot.slane %v1119_v20, %v783_v32  ;;  %v1124_v22 = vrot.slane %v1119_v20, %v779_v34 }
 0x14d   :  { %1480 = vmatpush2.bf16.msra.mxu0 %v2227_v23  ;;  %1523 = vmatpush2.bf16.msra.mxu1 %v2230_v24 }
 0x14e   :  { %1481 = vmatprep.subr.bf16.mxu0 %v2235_v25  ;;  %1524 = vmatprep.subr.bf16.mxu1 %v2238_v26 }
 0x151   :  { %1482 = vmatpush2.bf16.msra.mxu0 %v2233_v27  ;;  %1525 = vmatpush2.bf16.msra.mxu1 %v2236_v28 }
 0x152   :  { %2008 = vmatprep.subr.bf16.mxu0 %v2239_v29 }
 0x1d4   :  { %v991_v37 = vpop.f32.mrf.mxu0  ;;  %v1034_v38 = vpop.f32.mrf.mxu1 }
 0x1d5   :  { %v992_v51 = vadd.f32 %v991_v37, %v780_v41  ;;  %v1035_v52 = vadd.f32 %v1034_v38, %v788_v42 }
 0x1d6   :  { %v993_v43 = vpop.f32.mrf.mxu0  ;;  %v1036_v44 = vpop.f32.mrf.mxu1 }
 0x1d7   :  { %v994_v47 = vadd.f32 %v993_v43, %v784_v39  ;;  %v1037_v48 = vadd.f32 %v1036_v44, %v792_v40  ;;  %v1043_v63 = vmax.f32 %v992_v51, 0.0  ;;  %v1045_v0 = vmax.f32 %v1035_v52, 0.0 }
 0x1d8   :  { %v995_v45 = vpop.f32.mrf.mxu0  ;;  %v1038_v46 = vpop.f32.mrf.mxu1 }
 0x1d9   :  { %v996_v49 = vadd.f32 %v995_v45, %v780_v41  ;;  %v1039_v50 = vadd.f32 %v1038_v46, %v788_v42  ;;  %v1044_v59 = vmax.f32 %v994_v47, 0.0  ;;  %v1046_v60 = vmax.f32 %v1037_v48, 0.0 }
 0x1da   :  { %v997_v53 = vpop.f32.mrf.mxu0  ;;  %v1040_v54 = vpop.f32.mrf.mxu1 }
 0x1db   :  { %v998_v55 = vadd.f32 %v997_v53, %v784_v39  ;;  %v1041_v56 = vadd.f32 %v1040_v54, %v792_v40  ;;  %v1047_v57 = vmax.f32 %v996_v49, 0.0  ;;  %v1049_v58 = vmax.f32 %v1039_v50, 0.0  ;;  %v1894_v49 = vld [vmem:[%s2919_s8] ss:$0 sm:$0xff] }
 0x1dd   :  { %v1048_v61 = vmax.f32 %v998_v55, 0.0  ;;  %v1050_v62 = vmax.f32 %v1041_v56, 0.0  ;;  %v1051_v4 = vpack.c.bf16 %v1047_v57, %v1043_v63  ;;  %v1053_v5 = vpack.c.bf16 %v1049_v58, %v1045_v0 }
 0x1df   :  { %v1052_v1 = vpack.c.bf16 %v1048_v61, %v1044_v59  ;;  %v1054_v2 = vpack.c.bf16 %v1050_v62, %v1046_v60 }
 0x1e1   :  { %1483 = vmatprep.mubr.bf16.mxu0 %v1052_v1  ;;  %1526 = vmatprep.mubr.bf16.mxu1 %v1054_v2 }
 0x1e2   :  { %1484 = vmatmul.mubr.bf16.vlgmr.msra.gmra.mxu0 %v1051_v4  ;;  %1527 = vmatmul.mubr.bf16.vlgmr.msra.gmra.mxu1 %v1053_v5 }
 0x1e3   :  { %2009 = vmatpush3.bf16.msra.mxu0 %v2240_v3 }
 0x1e4   :  { %2010 = vmatprep.subr.bf16.mxu0 %v2241_v6 }
 0x1e7   :  { %2011 = vmatpush3.bf16.msra.mxu0 %v2242_v7 }
 0x1e8   :  { %2012 = vmatprep.subr.bf16.mxu0 %v2243_v8 }
 0x1eb   :  { %2013 = vmatpush3.bf16.msra.mxu0 %v2244_v9 }
 0x1ec   :  { %2014 = vmatprep.subr.bf16.mxu0 %v2245_v10 }
 0x1ef   :  { %2015 = vmatpush3.bf16.msra.mxu0 %v2246_v11 }
 0x1f0   :  { %2016 = vmatprep.subr.bf16.mxu0 %v2247_v12 }
 0x1f3   :  { %2017 = vmatpush3.bf16.msra.mxu0 %v2248_v13 }
 0x1f4   :  { %2018 = vmatprep.subr.bf16.mxu0 %v2249_v14 }
 0x1f7   :  { %2019 = vmatpush3.bf16.msra.mxu0 %v2250_v15 }
 0x1f8   :  { %2020 = vmatprep.subr.bf16.mxu0 %v2251_v16 }
 0x1fb   :  { %2021 = vmatpush3.bf16.msra.mxu0 %v2252_v17 }
 0x1fc   :  { %2022 = vmatprep.subr.bf16.mxu0 %v2253_v18 }
 0x1ff   :  { %2023 = vmatpush3.bf16.msra.mxu0 %v2254_v19 }
 0x2a2   :  { %v1485_v23 = vpop.f32.mrf.mxu0  ;;  %v1528_v24 = vpop.f32.mrf.mxu1 }
 0x2a3   :  { %v1486_v28 = vadd.f32 %v1485_v23, %v1124_v22 }
 0x2a4   :  { %v1487_v25 = vpop.f32.mrf.mxu0  ;;  %v1530_v26 = vpop.f32.mrf.mxu1 }
 0x2a5   :  { %v1488_v27 = vadd.f32 %v1487_v25, %v1128_v21  ;;  %v1529_v39 = vadd.f32 %v1528_v24, %v1486_v28 }
 0x2a6   :  { %v1489_v29 = vpop.f32.mrf.mxu0  ;;  %v1532_v30 = vpop.f32.mrf.mxu1 }
 0x2a7   :  { %v1490_v33 = vadd.f32 %v1489_v29, %v1124_v22  ;;  %v1531_v36 = vadd.f32 %v1530_v26, %v1488_v27  ;;  %v1537_v34 = vmax.f32 %v1529_v39, 0.0 }
 0x2a8   :  { %v1491_v35 = vpop.f32.mrf.mxu0  ;;  %v1534_v40 = vpop.f32.mrf.mxu1 }
 0x2a9   :  { %v1533_v37 = vadd.f32 %v1532_v30, %v1490_v33  ;;  %v1492_v38 = vadd.f32 %v1491_v35, %v1128_v21  ;;  %v1538_v42 = vmax.f32 %v1531_v36, 0.0 }
 0x2ab   :  { %v1535_v41 = vadd.f32 %v1534_v40, %v1492_v38  ;;  %v1539_v32 = vmax.f32 %v1533_v37, 0.0 }
 0x2ad   :  { %v1540_v31 = vmax.f32 %v1535_v41, 0.0  ;;  %v1541_v44 = vpack.c.bf16 %v1539_v32, %v1537_v34 }
 0x2af   :  { %v1542_v43 = vpack.c.bf16 %v1540_v31, %v1538_v42 }
 0x2b1   :  { %1710 = vmatprep.mubr.bf16.mxu0 %v1542_v43 }
 0x2b2   :  { %1711 = vmatmul.mubr.bf16.vlgmr.msra.gmra.mxu0 %v1541_v44 }
 0x372   :  { %v2024_v45 = vpop.f32.mrf.mxu0 }
 0x374   :  { %v2025_v46 = vpop.f32.mrf.mxu0 }
 0x375   :  { %v2026_v48 = vadd.f32 %v2025_v46, %v2024_v45 }
 0x376   :  { %v2027_v47 = vpop.f32.mrf.mxu0 }
 0x377   :  { %v1713_v52 = vadd.f32 %v2026_v48, %v1894_v49 }
 0x378   :  { %v2028_v50 = vpop.f32.mrf.mxu0 }
 0x379   :  { %v2029_v51 = vadd.f32 %v2028_v50, %v2027_v47 }
 0x37b   :  { %v1716_v53 = vadd.f32 %v2029_v51, %v1894_v49 }
 0x37d   :  { %v1918_v54 = vpack.c.bf16 %v1716_v53, %v1713_v52 }
 0x37f   :  { %1919 = vst [vmem:[%s2920_s9] sm:$0xff] %v1918_v54  }

</bundles_post_ra>
